<compile_context>
chip_gen: v5e
topology: v5e:2x2
jax: 0.10.0
libtpu: 0.0.40
codegen_flags: <defaults>
</compile_context>

<pallas_src>
import jax
import jax.numpy as jnp
from jax.experimental import pallas as pl
from jax.experimental.pallas import tpu as pltpu  # noqa: F401  (TPU backend)

# ---- static problem sizes (small, consistent with the module's forward) ----
B = 2            # batch
C_IN = 4         # input channels
H = W = 16       # spatial
C_FEAT = 32      # feature channels produced by the synthetic backbone
N_CLASSES = 10   # last_linear output
KH = KW = 3      # conv kernel
MODEL_NAME = "densenet121"   # triggers the relu + adaptive-avg-pool branch

HW = H * W                     # 256 spatial positions
K_IM2COL = KH * KW * C_IN      # 36 (contraction dim of the im2col matmul)


def net_kernel(xp_ref, wconv_ref, bconv_ref, wfc_ref, bfc_ref, out_ref):
    """Single invocation: whole batch, fused conv + bias + relu + pool + linear.

    xp_ref   : (B*HW, 36)  bf16 im2col patches
    wconv_ref: (36, 32)    bf16 im2col conv weight
    bconv_ref: (1, 32)     f32 conv bias
    wfc_ref  : (32, 10)    bf16 last_linear weight, (in, out)
    bfc_ref  : (1, 10)     f32 last_linear bias
    out_ref  : (B, 10)     f32 logits
    """
    # 3x3 'SAME' conv as ONE im2col matmul on the MXU (bf16 in, f32 accumulate).
    acc = jnp.dot(xp_ref[...], wconv_ref[...],
                  preferred_element_type=jnp.float32)          # (B*HW, 32) f32
    acc = acc + bconv_ref[...]                                 # bias broadcast

    # densenet branch of Net.forward: ReLU + AdaptiveAvgPool2d(1).
    # Epilogue kept in f32 (v5e VPU has no bf16 path).
    acc = jnp.maximum(acc, 0.0)
    pooled = jnp.mean(acc.reshape(B, HW, C_FEAT), axis=1)      # (B, 32) f32

    # flatten (already (B, C_FEAT)) + last_linear: bf16 MXU operands,
    # f32 accumulation, f32 bias add.
    out_ref[...] = (jnp.dot(pooled.astype(wfc_ref.dtype), wfc_ref[...],
                            preferred_element_type=jnp.float32)
                    + bfc_ref[...]).astype(out_ref.dtype)


def prepare_params(w_conv, b_conv, w_fc, b_fc):
    """One-time (model-init) weight layout: im2col reshape + bf16 cast of MXU operands."""
    w_im2col = w_conv.reshape(K_IM2COL, C_FEAT).astype(jnp.bfloat16)   # (36, 32)
    b_conv_p = b_conv.reshape(1, C_FEAT).astype(jnp.float32)           # (1, 32)
    w_fc_p = w_fc.astype(jnp.bfloat16)                                 # (32, 10)
    b_fc_p = b_fc.reshape(1, N_CLASSES).astype(jnp.float32)            # (1, 10)
    return w_im2col, b_conv_p, w_fc_p, b_fc_p


@jax.jit
def net_forward(x_nchw, w_im2col, b_conv_p, w_fc_p, b_fc_p):
    """Jitted forward: wrapper does only layout glue, all compute is in-kernel."""
    # NCHW -> NHWC, SAME halo pad, im2col (fused by XLA into one fusion).
    x_nhwc = jnp.transpose(x_nchw, (0, 2, 3, 1))                     # (B,H,W,Cin)
    x_pad = jnp.pad(x_nhwc, ((0, 0), (1, 1), (1, 1), (0, 0)))        # halo pad
    taps = [x_pad[:, dh:dh + H, dw:dw + W, :]
            for dh in range(KH) for dw in range(KW)]                 # 9 x (B,H,W,Cin)
    patches = jnp.stack(taps, axis=3).reshape(B * HW, K_IM2COL)      # (512, 36)
    patches = patches.astype(jnp.bfloat16)

    # Single grid step (no grid): each operand is one whole full-array VMEM
    # block, so weights/biases are DMA'd exactly once, nothing is re-pipelined,
    # and the short 36/32/10 lane dims are masked by Mosaic (no zero-padding).
    # TODO(synk): if B*H*W scales up, add a grid over patch rows (blocks of
    # 256-512 rows) with dimension_semantics=("parallel",) so v7x's second
    # TensorCore shares the work; irrelevant at 512 rows.
    return pl.pallas_call(
        net_kernel,
        out_shape=jax.ShapeDtypeStruct((B, N_CLASSES), jnp.float32),
    )(patches, w_im2col, b_conv_p, w_fc_p, b_fc_p)


def net_forward_ref(x_nchw, w_conv, b_conv, w_fc, b_fc):
    """Pure-JAX f32 reference (mirrors the PyTorch forward)."""
    x_nhwc = jnp.transpose(x_nchw, (0, 2, 3, 1))
    y = jax.lax.conv_general_dilated(
        x_nhwc, w_conv, window_strides=(1, 1), padding="SAME",
        dimension_numbers=("NHWC", "HWIO", "NHWC")) + b_conv[None, None]
    y = jnp.maximum(y, 0.0)                     # relu
    y = jnp.mean(y, axis=(1, 2))                # AdaptiveAvgPool2d(1) + flatten
    return y @ w_fc + b_fc                      # last_linear


if __name__ == "__main__":
    key = jax.random.PRNGKey(0)
    kx, kwc, kbc, kwf, kbf = jax.random.split(key, 5)

    # deterministic synthetic parameters (shapes implied by the module)
    x = jax.random.normal(kx, (B, C_IN, H, W), jnp.float32)                     # NCHW
    w_conv = 0.1 * jax.random.normal(kwc, (KH, KW, C_IN, C_FEAT), jnp.float32)  # HWIO
    b_conv = 0.1 * jax.random.normal(kbc, (C_FEAT,), jnp.float32)
    # nn.Linear stores (out,in) and applies x @ W.T + b; keep the (in,out) form.
    w_fc = 0.1 * jax.random.normal(kwf, (C_FEAT, N_CLASSES), jnp.float32)
    b_fc = 0.1 * jax.random.normal(kbf, (N_CLASSES,), jnp.float32)

    assert "densenet" in MODEL_NAME, \
        "this synthetic instantiation implements the densenet branch of Net.forward"

    # one-time weight preparation (model init), hoisted out of the call path
    params = prepare_params(w_conv, b_conv, w_fc, b_fc)

    out = jax.block_until_ready(net_forward(x, *params))

    ref = net_forward_ref(x, w_conv, b_conv, w_fc, b_fc)
    assert out.shape == (B, N_CLASSES)
    # bf16 MXU operands vs f32 reference -> relaxed tolerance (observed err ~1e-3)
    assert jnp.allclose(out, ref, atol=1e-2, rtol=1e-2), "mismatch vs JAX reference"

    print("KERNEL_OK")
</pallas_src>

<mosaic_0001>
module attributes {stable_mosaic.version = 11 : i64} {
  func.func @net_kernel(%arg0: memref<512x36xbf16, #tpu.memory_space<vmem>>, %arg1: memref<36x32xbf16, #tpu.memory_space<vmem>>, %arg2: memref<1x32xf32, #tpu.memory_space<vmem>>, %arg3: memref<32x10xbf16, #tpu.memory_space<vmem>>, %arg4: memref<1x10xf32, #tpu.memory_space<vmem>>, %arg5: memref<2x10xf32, #tpu.memory_space<vmem>>) attributes {dimension_semantics = [], scalar_prefetch = 0 : i64, scratch_operands = 0 : i64, tpu.core_type = #tpu.core_type<tc>} {
    %c0 = arith.constant 0 : index
    %c0_0 = arith.constant 0 : index
    %0 = vector.load %arg0[%c0, %c0_0] : memref<512x36xbf16, #tpu.memory_space<vmem>>, vector<512x36xbf16>
    %c0_1 = arith.constant 0 : index
    %c0_2 = arith.constant 0 : index
    %1 = vector.load %arg1[%c0_1, %c0_2] : memref<36x32xbf16, #tpu.memory_space<vmem>>, vector<36x32xbf16>
    %cst = arith.constant dense<0.000000e+00> : vector<512x32xf32>
    %2 = tpu.matmul %0, %1, %cst {dimension_numbers = #tpu.dot_dimension_numbers<[1], [0], [0], [1], [0, 0, 1, 1], [], []>} : vector<512x36xbf16>, vector<36x32xbf16>, vector<512x32xf32> -> vector<512x32xf32>
    %c0_3 = arith.constant 0 : index
    %c0_4 = arith.constant 0 : index
    %3 = vector.load %arg2[%c0_3, %c0_4] : memref<1x32xf32, #tpu.memory_space<vmem>>, vector<1x32xf32>
    %4 = vector.broadcast %3 : vector<1x32xf32> to vector<512x32xf32>
    %5 = arith.addf %2, %4 : vector<512x32xf32>
    %cst_5 = arith.constant 0.000000e+00 : f32
    %6 = vector.broadcast %cst_5 : f32 to vector<512x32xf32>
    %7 = arith.maximumf %5, %6 : vector<512x32xf32>
    %8 = vector.shape_cast %7 : vector<512x32xf32> to vector<2x256x32xf32>
    %cst_6 = arith.constant dense<0.000000e+00> : vector<2x32xf32>
    %9 = vector.multi_reduction <add>, %8, %cst_6 [1] : vector<2x256x32xf32> to vector<2x32xf32>
    %cst_7 = arith.constant 2.560000e+02 : f32
    %10 = vector.broadcast %cst_7 : f32 to vector<2x32xf32>
    %11 = arith.divf %9, %10 : vector<2x32xf32>
    %12 = arith.truncf %11 : vector<2x32xf32> to vector<2x32xbf16>
    %c0_8 = arith.constant 0 : index
    %c0_9 = arith.constant 0 : index
    %13 = vector.load %arg3[%c0_8, %c0_9] : memref<32x10xbf16, #tpu.memory_space<vmem>>, vector<32x10xbf16>
    %cst_10 = arith.constant dense<0.000000e+00> : vector<2x10xf32>
    %14 = tpu.matmul %12, %13, %cst_10 {dimension_numbers = #tpu.dot_dimension_numbers<[1], [0], [0], [1], [0, 0, 1, 1], [], []>} : vector<2x32xbf16>, vector<32x10xbf16>, vector<2x10xf32> -> vector<2x10xf32>
    %c0_11 = arith.constant 0 : index
    %c0_12 = arith.constant 0 : index
    %15 = vector.load %arg4[%c0_11, %c0_12] : memref<1x10xf32, #tpu.memory_space<vmem>>, vector<1x10xf32>
    %16 = vector.broadcast %15 : vector<1x10xf32> to vector<2x10xf32>
    %17 = arith.addf %14, %16 : vector<2x10xf32>
    %c0_13 = arith.constant 0 : index
    %c0_14 = arith.constant 0 : index
    %18 = vector.load %arg5[%c0_13, %c0_14] : memref<2x10xf32, #tpu.memory_space<vmem>>, vector<2x10xf32>
    tpu.vector_store %arg5[%c0_13, %c0_14], %17 {strides = array<i32>} : memref<2x10xf32, #tpu.memory_space<vmem>>, vector<2x10xf32>,
    return
  }
}

</mosaic_0001>

<bundles_post_ra>
// kernel: net_forward.1
= control target key start
LH: loop header
LB: loop body
LE: loop exit
PB: predicated region body
PF: predicated region fallthrough
CT: control target
= control target key end

     0   :  { %vm367_vm0 = vcmask 1041408   ;;  %s1486_s0 = inlined_call_operand.vmem [shape: bf16[512,36], index: 0, kind: input, shape index: {}]   ;;  %s1487_s1 = inlined_call_operand.vmem [shape: bf16[36,32], index: 1, kind: input, shape index: {}]   ;;  %s1488_s2 = inlined_call_operand.vmem [shape: f32[1,32], index: 2, kind: input, shape index: {}]   ;;  %s1489_s3 = inlined_call_operand.vmem [shape: bf16[32,10], index: 3, kind: input, shape index: {}]   ;;  %s1490_s4 = inlined_call_operand.vmem [shape: f32[1,10], index: 4, kind: input, shape index: {}]   ;;  %s1491_s5 = inlined_call_operand.hbm [shape: f32[2,10], index: 5, kind: output, shape index: {}]  }
   0x1   :  { %v90_v0 = vld [vmem:[%s1487_s1 + $0x10] sm:$0x3] }
   0x2   :  { %v264_v1 = vunpack.c.l.b16 %v90_v0 }
   0x4   :  { %v267_v2 = vpack.c.b16 %v264_v1, %v264_v1 }
   0x5   :  { %10 = vsyncpa [#allocation3], 0  ;;  %v1025_v4 = vld [vmem:[%s1487_s1 + $0x8] sm:$0xff]  ;;  %v1024_v5 = vld [vmem:[%s1487_s1] sm:$0xff]  ;;  %vm270_vm1 = vcmask 293888   ;;  %vm604_vm2 = vcmask 261120  }
   0x6   :  { %v369_v3 = vsel %vm367_vm0, %v267_v2, 0  ;;  %v992_v6 = vld [vmem:[%s1486_s0] sm:$0xff]  ;;  %v1006_v7 = vld [vmem:[%s1486_s0 + $0x70] sm:$0xff]  ;;  %v1015_v8 = vld [vmem:[%s1486_s0 + $0xb8] sm:$0xff]  ;;  %vm766_vm4 = vcmask 1041409   ;;  %s1070_s15 = smov [#allocation2]  }
   0x7   :  { %376 = vmatpush.bf16.msra.mxu0 %v369_v3  ;;  %1029 = vmatpush.bf16.msra.mxu2 %v369_v3  ;;  %v993_v9 = vld [vmem:[%s1486_s0 + $0x8] sm:$0xff]  ;;  %v1007_v10 = vld [vmem:[%s1486_s0 + $0x78] sm:$0xff]  ;;  %v1016_v11 = vld [vmem:[%s1486_s0 + $0xc0] sm:$0xff]  ;;  %s804_s16 = sshll.u32 %s1070_s15, 4  ;;  %s806_s19 = sshll.u32 %s1491_s5, 4  ;;  %vm797_vm5 = vcmask 74752   ;;  %s805_s16 = int_to_ptr.vmem [resolvable:$true] %s804_s16  ;;  %s807_s19 = int_to_ptr.hbm [resolvable:$true] %s806_s19 }
   0x8   :  { %1030 = vmatpush.bf16.msra.mxu3 %v369_v3  ;;  %1028 = vmatpush.bf16.msra.mxu1 %v369_v3  ;;  %v1000_v12 = vld [vmem:[%s1486_s0 + $0x40] sm:$0xff]  ;;  %v994_v13 = vld [vmem:[%s1486_s0 + $0x10] sm:$0xff]  ;;  %v1017_v15 = vld [vmem:[%s1486_s0 + $0xc8] sm:$0xff] }
   0x9   :  { %v1008_v14 = vld [vmem:[%s1486_s0 + $0x80] sm:$0xff]  ;;  %v1001_v16 = vld [vmem:[%s1486_s0 + $0x48] sm:$0xff]  ;;  %v995_v17 = vld [vmem:[%s1486_s0 + $0x18] sm:$0xff] }
   0xa   :  { %v1009_v18 = vld [vmem:[%s1486_s0 + $0x88] sm:$0xff]  ;;  %v1018_v19 = vld [vmem:[%s1486_s0 + $0xd0] sm:$0xff]  ;;  %v996_v21 = vld [vmem:[%s1486_s0 + $0x20] sm:$0xff] }
   0xb   :  { %377 = vmatpush.bf16.msra.mxu0 %v1025_v4  ;;  %1032 = vmatpush.bf16.msra.mxu2 %v1025_v4  ;;  %v1002_v20 = vld [vmem:[%s1486_s0 + $0x50] sm:$0xff]  ;;  %v1019_v23 = vld [vmem:[%s1486_s0 + $0xd8] sm:$0xff]  ;;  %v997_v25 = vld [vmem:[%s1486_s0 + $0x28] sm:$0xff] }
   0xc   :  { %1033 = vmatpush.bf16.msra.mxu3 %v1025_v4  ;;  %1031 = vmatpush.bf16.msra.mxu1 %v1025_v4  ;;  %v1010_v22 = vld [vmem:[%s1486_s0 + $0x90] sm:$0xff]  ;;  %v1003_v24 = vld [vmem:[%s1486_s0 + $0x58] sm:$0xff]  ;;  %v1020_v27 = vld [vmem:[%s1486_s0 + $0xe0] sm:$0xff] }
   0xd   :  { %v1011_v26 = vld [vmem:[%s1486_s0 + $0x98] sm:$0xff]  ;;  %v1004_v28 = vld [vmem:[%s1486_s0 + $0x60] sm:$0xff]  ;;  %v998_v29 = vld [vmem:[%s1486_s0 + $0x30] sm:$0xff] }
   0xe   :  { %v1012_v30 = vld [vmem:[%s1486_s0 + $0xa0] sm:$0xff]  ;;  %v1021_v31 = vld [vmem:[%s1486_s0 + $0xe8] sm:$0xff]  ;;  %v999_v33 = vld [vmem:[%s1486_s0 + $0x38] sm:$0xff] }
   0xf   :  { %378 = vmatpush.bf16.msra.mxu0 %v1024_v5  ;;  %1035 = vmatpush.bf16.msra.mxu2 %v1024_v5  ;;  %v1005_v32 = vld [vmem:[%s1486_s0 + $0x68] sm:$0xff]  ;;  %v1022_v35 = vld [vmem:[%s1486_s0 + $0xf0] sm:$0xff]  ;;  %v1023_v38 = vld [vmem:[%s1486_s0 + $0xf8] sm:$0xff] }
  0x10   :  { %1036 = vmatpush.bf16.msra.mxu3 %v1024_v5  ;;  %1034 = vmatpush.bf16.msra.mxu1 %v1024_v5  ;;  %v1013_v34 = vld [vmem:[%s1486_s0 + $0xa8] sm:$0xff]  ;;  %v1014_v36 = vld [vmem:[%s1486_s0 + $0xb0] sm:$0xff]  ;;  %v1239_v39 = vld [vmem:[%s1488_s2] ss:$0 sm:$0xff] }
  0x12   :  { %951 = vmatmul.msk.bf16.vlgmr.msra.gmra.mxu0 %vm270_vm1, %v992_v6  ;;  %965 = vmatmul.msk.bf16.vlgmr.msra.gmra.mxu2 %vm270_vm1, %v1006_v7 }
  0x13   :  { %974 = vmatmul.msk.bf16.vlgmr.msra.gmra.mxu3 %vm270_vm1, %v1015_v8  ;;  %959 = vmatmul.msk.bf16.vlgmr.msra.gmra.mxu1 %vm270_vm1, %v1000_v12 }
  0x22   :  { %952 = vmatmul.msk.bf16.gmra.mxu0 %vm270_vm1, %v993_v9  ;;  %966 = vmatmul.msk.bf16.gmra.mxu2 %vm270_vm1, %v1007_v10 }
  0x23   :  { %975 = vmatmul.msk.bf16.gmra.mxu3 %vm270_vm1, %v1016_v11  ;;  %960 = vmatmul.msk.bf16.gmra.mxu1 %vm270_vm1, %v1001_v16 }
  0x32   :  { %953 = vmatmul.msk.bf16.gmra.mxu0 %vm270_vm1, %v994_v13  ;;  %967 = vmatmul.msk.bf16.gmra.mxu2 %vm270_vm1, %v1008_v14 }
  0x33   :  { %976 = vmatmul.msk.bf16.gmra.mxu3 %vm270_vm1, %v1017_v15  ;;  %961 = vmatmul.msk.bf16.gmra.mxu1 %vm270_vm1, %v1002_v20 }
  0x42   :  { %954 = vmatmul.msk.bf16.gmra.mxu0 %vm270_vm1, %v995_v17  ;;  %968 = vmatmul.msk.bf16.gmra.mxu2 %vm270_vm1, %v1009_v18 }
  0x43   :  { %977 = vmatmul.msk.bf16.gmra.mxu3 %vm270_vm1, %v1018_v19  ;;  %962 = vmatmul.msk.bf16.gmra.mxu1 %vm270_vm1, %v1003_v24 }
  0x52   :  { %955 = vmatmul.msk.bf16.gmra.mxu0 %vm270_vm1, %v996_v21  ;;  %969 = vmatmul.msk.bf16.gmra.mxu2 %vm270_vm1, %v1010_v22 }
  0x53   :  { %978 = vmatmul.msk.bf16.gmra.mxu3 %vm270_vm1, %v1019_v23  ;;  %963 = vmatmul.msk.bf16.gmra.mxu1 %vm270_vm1, %v1004_v28 }
  0x62   :  { %956 = vmatmul.msk.bf16.gmra.mxu0 %vm270_vm1, %v997_v25  ;;  %970 = vmatmul.msk.bf16.gmra.mxu2 %vm270_vm1, %v1011_v26 }
  0x63   :  { %979 = vmatmul.msk.bf16.gmra.mxu3 %vm270_vm1, %v1020_v27  ;;  %964 = vmatmul.msk.bf16.gmra.mxu1 %vm270_vm1, %v1005_v32 }
  0x72   :  { %957 = vmatmul.msk.bf16.gmra.mxu0 %vm270_vm1, %v998_v29  ;;  %971 = vmatmul.msk.bf16.gmra.mxu2 %vm270_vm1, %v1012_v30 }
  0x73   :  { %980 = vmatmul.msk.bf16.gmra.mxu3 %vm270_vm1, %v1021_v31 }
  0x82   :  { %958 = vmatmul.msk.bf16.gmra.mxu0 %vm270_vm1, %v999_v33  ;;  %972 = vmatmul.msk.bf16.gmra.mxu2 %vm270_vm1, %v1013_v34 }
  0x83   :  { %981 = vmatmul.msk.bf16.gmra.mxu3 %vm270_vm1, %v1022_v35 }
  0x8f   :  { %v380_v37 = vpop.f32.mrf.mxu0 }
  0x90   :  { %v381_v40 = vadd.f32 %v1239_v39, %v380_v37  ;;  %v1262_v61 = vpop.f32.mrf.mxu1 }
  0x92   :  { %973 = vmatmul.msk.bf16.gmra.mxu2 %vm270_vm1, %v1014_v36  ;;  %v540_v42 = vmax.f32 %v381_v40, 0.0 }
  0x93   :  { %982 = vmatmul.msk.bf16.gmra.mxu3 %vm270_vm1, %v1023_v38 }
  0x94   :  { %v605_v46 = vsel %vm604_vm2, %v540_v42, 0.0 }
  0x95   :  { %v1244_v41 = vpop.f32.mrf.mxu2 }
  0x96   :  { %v1246_v43 = vpop.f32.mrf.mxu3 }
  0x97   :  { %v382_v44 = vpop.f32.mrf.mxu0 }
  0x98   :  { %v383_v45 = vadd.f32 %v1239_v39, %v382_v44  ;;  %v1270_v6 = vpop.f32.mrf.mxu1  ;;  %v1027_v44 = vld [vmem:[%s1489_s3 + $0x8] sm:$0xff] }
  0x99   :  { %790 = vmatpush.bf16.msrb.mxu1 %v1027_v44 }
  0x9a   :  { %v541_v47 = vmax.f32 %v383_v45, 0.0 }
  0x9c   :  { %v606_v48 = vsel %vm604_vm2, %v541_v47, 0.0 }
  0x9d   :  { %v607_v49 = vadd.f32 %v606_v48, %v605_v46  ;;  %v1251_v50 = vpop.f32.mrf.mxu2 }
  0x9e   :  { %v1253_v51 = vpop.f32.mrf.mxu3 }
  0x9f   :  { %v385_v52 = vpop.f32.mrf.mxu0 }
  0xa0   :  { %v386_v53 = vadd.f32 %v1239_v39, %v385_v52  ;;  %v1276_v14 = vpop.f32.mrf.mxu1 }
  0xa2   :  { %v542_v54 = vmax.f32 %v386_v53, 0.0 }
  0xa4   :  { %v608_v55 = vsel %vm604_vm2, %v542_v54, 0.0 }
  0xa5   :  { %v609_v56 = vadd.f32 %v608_v55, %v607_v49  ;;  %v1257_v57 = vpop.f32.mrf.mxu2 }
  0xa6   :  { %v1259_v58 = vpop.f32.mrf.mxu3 }
  0xa7   :  { %v387_v59 = vpop.f32.mrf.mxu0 }
  0xa8   :  { %v388_v60 = vadd.f32 %v1239_v39, %v387_v59  ;;  %v1284_v26 = vpop.f32.mrf.mxu1 }
  0xaa   :  { %v543_v62 = vmax.f32 %v388_v60, 0.0 }
  0xac   :  { %v610_v63 = vsel %vm604_vm2, %v543_v62, 0.0 }
  0xad   :  { %v611_v0 = vadd.f32 %v610_v63, %v609_v56  ;;  %v1265_v1 = vpop.f32.mrf.mxu2 }
  0xae   :  { %v1267_v3 = vpop.f32.mrf.mxu3 }
  0xaf   :  { %v390_v2 = vpop.f32.mrf.mxu0 }
  0xb0   :  { %v391_v4 = vadd.f32 %v1239_v39, %v390_v2  ;;  %v1291_v33 = vpop.f32.mrf.mxu1 }
  0xb2   :  { %v544_v5 = vmax.f32 %v391_v4, 0.0 }
  0xb4   :  { %v612_v7 = vsel %vm604_vm2, %v544_v5, 0.0 }
  0xb5   :  { %v613_v8 = vadd.f32 %v612_v7, %v611_v0  ;;  %v460_v9 = vpop.f32.mrf.mxu2 }
  0xb6   :  { %v1273_v11 = vpop.f32.mrf.mxu3  ;;  %v461_v12 = vadd.f32 %v1239_v39, %v460_v9 }
  0xb7   :  { %v392_v10 = vpop.f32.mrf.mxu0 }
  0xb8   :  { %v572_v15 = vmax.f32 %v461_v12, 0.0  ;;  %v1295_v37 = vpop.f32.mrf.mxu1  ;;  %v393_v52 = vadd.f32 %v1239_v39, %v392_v10 }
  0xba   :  { %v674_v19 = vsel %vm604_vm2, %v572_v15, 0.0  ;;  %v545_v56 = vmax.f32 %v393_v52, 0.0 }
  0xbc   :  { %v614_v2 = vsel %vm604_vm2, %v545_v56, 0.0 }
  0xbd   :  { %v462_v13 = vpop.f32.mrf.mxu2 }
  0xbe   :  { %v463_v16 = vadd.f32 %v1239_v39, %v462_v13  ;;  %v1281_v22 = vpop.f32.mrf.mxu3  ;;  %v615_v13 = vadd.f32 %v614_v2, %v613_v8 }
  0xbf   :  { %v395_v17 = vpop.f32.mrf.mxu0 }
  0xc0   :  { %v573_v18 = vmax.f32 %v463_v16, 0.0  ;;  %v1306_v46 = vpop.f32.mrf.mxu1  ;;  %v396_v55 = vadd.f32 %v1239_v39, %v395_v17 }
  0xc2   :  { %v675_v20 = vsel %vm604_vm2, %v573_v18, 0.0  ;;  %v546_v60 = vmax.f32 %v396_v55, 0.0 }
  0xc3   :  { %v676_v21 = vadd.f32 %v675_v20, %v674_v19 }
  0xc4   :  { %v616_v9 = vsel %vm604_vm2, %v546_v60, 0.0 }
  0xc5   :  { %v465_v23 = vpop.f32.mrf.mxu2  ;;  %v617_v19 = vadd.f32 %v616_v9, %v615_v13  ;;  %v423_v13 = vadd.f32 %v1239_v39, %v1270_v6  ;;  %v428_v6 = vadd.f32 %v1239_v39, %v1284_v26  ;;  %v431_v26 = vadd.f32 %v1239_v39, %v1291_v33 }
  0xc6   :  { %v466_v24 = vadd.f32 %v1239_v39, %v465_v23  ;;  %v1289_v31 = vpop.f32.mrf.mxu3 }
  0xc7   :  { %v397_v25 = vpop.f32.mrf.mxu0 }
  0xc8   :  { %v574_v27 = vmax.f32 %v466_v24, 0.0  ;;  %v1313_v54 = vpop.f32.mrf.mxu1  ;;  %v398_v59 = vadd.f32 %v1239_v39, %v397_v25 }
  0xca   :  { %v677_v28 = vsel %vm604_vm2, %v574_v27, 0.0  ;;  %v547_v4 = vmax.f32 %v398_v59, 0.0 }
  0xcb   :  { %v1287_v29 = vadd.f32 %v677_v28, %v676_v21 }
  0xcc   :  { %v618_v16 = vsel %vm604_vm2, %v547_v4, 0.0 }
  0xcd   :  { %v467_v30 = vpop.f32.mrf.mxu2  ;;  %v619_v24 = vadd.f32 %v618_v16, %v617_v19  ;;  %v426_v16 = vadd.f32 %v1239_v39, %v1276_v14 }
  0xce   :  { %v1293_v36 = vpop.f32.mrf.mxu3 }
  0xcf   :  { %v400_v32 = vpop.f32.mrf.mxu0 }
  0xd0   :  { %v401_v62 = vadd.f32 %v1239_v39, %v400_v32  ;;  %v1326_v15 = vpop.f32.mrf.mxu1 }
  0xd2   :  { %v548_v10 = vmax.f32 %v401_v62, 0.0  ;;  %v468_v62 = vadd.f32 %v1239_v39, %v467_v30 }
  0xd4   :  { %v620_v20 = vsel %vm604_vm2, %v548_v10, 0.0 }
  0xd5   :  { %v470_v34 = vpop.f32.mrf.mxu2  ;;  %v621_v32 = vadd.f32 %v620_v20, %v619_v24 }
  0xd6   :  { %v1299_v42 = vpop.f32.mrf.mxu3  ;;  %v471_v10 = vadd.f32 %v1239_v39, %v470_v34 }
  0xd7   :  { %v402_v35 = vpop.f32.mrf.mxu0 }
  0xd8   :  { %v403_v5 = vadd.f32 %v1239_v39, %v402_v35  ;;  %v1339_v60 = vpop.f32.mrf.mxu1  ;;  %v576_v24 = vmax.f32 %v471_v10, 0.0 }
  0xda   :  { %v549_v17 = vmax.f32 %v403_v5, 0.0  ;;  %v421_v5 = vadd.f32 %v1239_v39, %v1262_v61 }
  0xdc   :  { %v622_v27 = vsel %vm604_vm2, %v549_v17, 0.0 }
  0xdd   :  { %v1297_v38 = vpop.f32.mrf.mxu2  ;;  %v623_v55 = vadd.f32 %v622_v27, %v621_v32 }
  0xde   :  { %v1308_v48 = vpop.f32.mrf.mxu3  ;;  %v473_v19 = vadd.f32 %v1239_v39, %v1297_v38 }
  0xdf   :  { %v405_v40 = vpop.f32.mrf.mxu0 }
  0xe0   :  { %v406_v12 = vadd.f32 %v1239_v39, %v405_v40 }
  0xe2   :  { %v550_v21 = vmax.f32 %v406_v12, 0.0 }
  0xe4   :  { %v624_v44 = vsel %vm604_vm2, %v550_v21, 0.0  ;;  %v556_v21 = vmax.f32 %v421_v5, 0.0  ;;  %v433_v5 = vadd.f32 %v1239_v39, %v1295_v37 }
  0xe5   :  { %v1304_v45 = vpop.f32.mrf.mxu2  ;;  %v625_v59 = vadd.f32 %v624_v44, %v623_v55 }
  0xe6   :  { %v1320_v0 = vpop.f32.mrf.mxu3  ;;  %v476_v14 = vadd.f32 %v1239_v39, %v1304_v45  ;;  %v445_v45 = vpop.f32.mrf.mxu1 }
  0xe7   :  { %v407_v47 = vpop.f32.mrf.mxu0 }
  0xe8   :  { %v408_v18 = vadd.f32 %v1239_v39, %v407_v47 }
  0xea   :  { %v551_v28 = vmax.f32 %v408_v18, 0.0  ;;  %v575_v18 = vmax.f32 %v468_v62, 0.0  ;;  %v578_v62 = vmax.f32 %v476_v14, 0.0 }
  0xec   :  { %v626_v56 = vsel %vm604_vm2, %v551_v28, 0.0  ;;  %v557_v28 = vmax.f32 %v423_v13, 0.0  ;;  %v679_v38 = vsel %vm604_vm2, %v575_v18, 0.0  ;;  %v685_v18 = vsel %vm604_vm2, %v578_v62, 0.0 }
  0xed   :  { %v1310_v49 = vpop.f32.mrf.mxu2  ;;  %v446_v62 = vadd.f32 %v1239_v39, %v445_v45 }
  0xee   :  { %v1334_v40 = vpop.f32.mrf.mxu3  ;;  %v478_v44 = vadd.f32 %v1239_v39, %v1310_v49  ;;  %v638_v49 = vsel %vm604_vm2, %v557_v28, 0.0 }
  0xef   :  { %v410_v53 = vpop.f32.mrf.mxu0 }
  0xf0   :  { %v411_v23 = vadd.f32 %v1239_v39, %v410_v53 }
  0xf2   :  { %v552_v47 = vmax.f32 %v411_v23, 0.0 }
  0xf4   :  { %v628_v2 = vsel %vm604_vm2, %v552_v47, 0.0 }
  0xf5   :  { %v1318_v63 = vpop.f32.mrf.mxu2 }
  0xf6   :  { %v1355_v23 = vpop.f32.mrf.mxu3 }
  0xf7   :  { %v412_v7 = vpop.f32.mrf.mxu0 }
  0xf8   :  { %v413_v8 = vadd.f32 %v1239_v39, %v412_v7  ;;  %v627_v7 = vadd.f32 %v626_v56, %v625_v59  ;;  %v559_v59 = vmax.f32 %v428_v6, 0.0 }
  0xfa   :  { %v553_v53 = vmax.f32 %v413_v8, 0.0  ;;  %v629_v17 = vadd.f32 %v628_v2, %v627_v7  ;;  %v558_v8 = vmax.f32 %v426_v16, 0.0  ;;  %v481_v2 = vadd.f32 %v1239_v39, %v1318_v63 }
  0xfb   :  { %v436_v63 = vadd.f32 %v1239_v39, %v1306_v46  ;;  %v441_v46 = vadd.f32 %v1239_v39, %v1326_v15 }
  0xfc   :  { %v630_v12 = vsel %vm604_vm2, %v553_v53, 0.0  ;;  %v681_v53 = vsel %vm604_vm2, %v576_v24, 0.0  ;;  %v640_v33 = vsel %vm604_vm2, %v558_v8, 0.0 }
  0xfd   :  { %v482_v25 = vpop.f32.mrf.mxu2  ;;  %v631_v34 = vadd.f32 %v630_v12, %v629_v17  ;;  %v579_v12 = vmax.f32 %v478_v44, 0.0  ;;  %v560_v17 = vmax.f32 %v431_v26, 0.0 }
  0xfe   :  { %v483_v13 = vadd.f32 %v1239_v39, %v482_v25  ;;  %v1385_v25 = vpop.f32.mrf.mxu3 }
  0xff   :  { %v415_v35 = vpop.f32.mrf.mxu0  ;;  %v687_v24 = vsel %vm604_vm2, %v579_v12, 0.0  ;;  %v644_v28 = vsel %vm604_vm2, %v560_v17, 0.0 }
 0x100   :  { %v416_v52 = vadd.f32 %v1239_v39, %v415_v35  ;;  %v577_v35 = vmax.f32 %v473_v19, 0.0  ;;  %v580_v19 = vmax.f32 %v481_v2, 0.0  ;;  %v581_v6 = vmax.f32 %v483_v13, 0.0 }
 0x102   :  { %v554_v4 = vmax.f32 %v416_v52, 0.0  ;;  %v636_v52 = vsel %vm604_vm2, %v556_v21, 0.0  ;;  %v683_v10 = vsel %vm604_vm2, %v577_v35, 0.0  ;;  %v438_v21 = vadd.f32 %v1239_v39, %v1313_v54 }
 0x103   :  { %v443_v35 = vadd.f32 %v1239_v39, %v1339_v60 }
 0x104   :  { %v632_v61 = vsel %vm604_vm2, %v554_v4, 0.0  ;;  %v680_v4 = vadd.f32 %v679_v38, %v1287_v29  ;;  %v642_v29 = vsel %vm604_vm2, %v559_v59, 0.0  ;;  %v689_v38 = vsel %vm604_vm2, %v580_v19, 0.0 }
 0x105   :  { %v485_v9 = vpop.f32.mrf.mxu2  ;;  %v633_v32 = vadd.f32 %v632_v61, %v631_v34  ;;  %v563_v15 = vmax.f32 %v438_v21, 0.0 }
 0x106   :  { %v682_v16 = vadd.f32 %v681_v53, %v680_v4  ;;  %v486_v37 = vadd.f32 %v1239_v39, %v485_v9  ;;  %v562_v9 = vmax.f32 %v436_v63, 0.0  ;;  %v564_v53 = vmax.f32 %v441_v46, 0.0 }
 0x107   :  { %v417_v30 = vpop.f32.mrf.mxu0  ;;  %v566_v63 = vmax.f32 %v446_v62, 0.0 }
 0x108   :  { %v418_v20 = vadd.f32 %v1239_v39, %v417_v30  ;;  %v684_v61 = vadd.f32 %v683_v10, %v682_v16  ;;  %v582_v54 = vmax.f32 %v486_v37, 0.0  ;;  %v648_v4 = vsel %vm604_vm2, %v562_v9, 0.0 }
 0x109   :  { %v496_v10 = vadd.f32 %v1239_v39, %v1246_v43  ;;  %v650_v16 = vsel %vm604_vm2, %v563_v15, 0.0  ;;  %v652_v17 = vsel %vm604_vm2, %v564_v53, 0.0  ;;  %v458_v15 = vadd.f32 %v1239_v39, %v1265_v1 }
 0x10a   :  { %v555_v27 = vmax.f32 %v418_v20, 0.0  ;;  %v561_v20 = vmax.f32 %v433_v5, 0.0  ;;  %v693_v60 = vsel %vm604_vm2, %v582_v54, 0.0  ;;  %v565_v5 = vmax.f32 %v443_v35, 0.0 }
 0x10b   :  { %v586_v46 = vmax.f32 %v496_v10, 0.0  ;;  %v503_v54 = vadd.f32 %v1239_v39, %v1267_v3  ;;  %v506_v3 = vadd.f32 %v1239_v39, %v1273_v11  ;;  %v511_v10 = vadd.f32 %v1239_v39, %v1289_v31 }
 0x10c   :  { %v634_v47 = vsel %vm604_vm2, %v555_v27, 0.0  ;;  %v686_v27 = vadd.f32 %v685_v18, %v684_v61  ;;  %v1411_v61 = vpop.f32.mrf.mxu3  ;;  %v654_v43 = vsel %vm604_vm2, %v565_v5, 0.0  ;;  %v516_v31 = vadd.f32 %v1239_v39, %v1299_v42 }
 0x10d   :  { %v635_v55 = vadd.f32 %v634_v47, %v633_v32  ;;  %v487_v56 = vpop.f32.mrf.mxu2 }
 0x10e   :  { %v488_v14 = vadd.f32 %v1239_v39, %v487_v56  ;;  %v688_v47 = vadd.f32 %v687_v24, %v686_v27  ;;  %v691_v56 = vsel %vm604_vm2, %v581_v6, 0.0  ;;  %v453_v24 = vadd.f32 %v1239_v39, %v1251_v50 }
 0x10f   :  { %v637_v7 = vadd.f32 %v636_v52, %v635_v55  ;;  %v646_v52 = vsel %vm604_vm2, %v561_v20, 0.0  ;;  %v447_v55 = vpop.f32.mrf.mxu1 }
 0x110   :  { %v583_v59 = vmax.f32 %v488_v14, 0.0  ;;  %v690_v2 = vadd.f32 %v689_v38, %v688_v47  ;;  %v656_v14 = vsel %vm604_vm2, %v566_v63, 0.0  ;;  %v456_v38 = vadd.f32 %v1239_v39, %v1257_v57 }
 0x111   :  { %v639_v30 = vadd.f32 %v638_v49, %v637_v7 }
 0x112   :  { %v692_v12 = vadd.f32 %v691_v56, %v690_v2  ;;  %v695_v45 = vsel %vm604_vm2, %v583_v59, 0.0  ;;  %v570_v59 = vmax.f32 %v456_v38, 0.0  ;;  %v589_v2 = vmax.f32 %v503_v54, 0.0 }
 0x113   :  { %v641_v34 = vadd.f32 %v640_v33, %v639_v30  ;;  %v448_v33 = vadd.f32 %v1239_v39, %v447_v55  ;;  %v451_v30 = vadd.f32 %v1239_v39, %v1244_v41  ;;  %v1069_v38 = vmov 256.0  }
 0x114   :  { %v694_v18 = vadd.f32 %v693_v60, %v692_v12  ;;  %v532_v5 = vpop.f32.mrf.mxu3  ;;  %1041 = vrcp.f32 %v1069_v38 }
 0x115   :  { %v643_v8 = vadd.f32 %v642_v29, %v641_v34  ;;  %v490_v32 = vpop.f32.mrf.mxu2  ;;  %v498_v29 = vadd.f32 %v1239_v39, %v1253_v51  ;;  %v567_v34 = vmax.f32 %v448_v33, 0.0  ;;  %v501_v51 = vadd.f32 %v1239_v39, %v1259_v58 }
 0x116   :  { %v491_v44 = vadd.f32 %v1239_v39, %v490_v32  ;;  %v696_v41 = vadd.f32 %v695_v45, %v694_v18  ;;  %v590_v33 = vmax.f32 %v506_v3, 0.0 }
 0x117   :  { %v645_v26 = vadd.f32 %v644_v28, %v643_v8  ;;  %v568_v28 = vmax.f32 %v451_v30, 0.0  ;;  %v587_v9 = vmax.f32 %v498_v29, 0.0  ;;  %v658_v35 = vsel %vm604_vm2, %v567_v34, 0.0 }
 0x118   :  { %v584_v7 = vmax.f32 %v491_v44, 0.0  ;;  %v569_v44 = vmax.f32 %v453_v24, 0.0  ;;  %v588_v57 = vmax.f32 %v501_v51, 0.0  ;;  %v709_v18 = vsel %vm604_vm2, %v590_v33, 0.0 }
 0x119   :  { %v647_v49 = vadd.f32 %v646_v52, %v645_v26  ;;  %v1026_v52 = vld [vmem:[%s1489_s3] sm:$0xff]  ;;  %v701_v26 = vsel %vm604_vm2, %v586_v46, 0.0  ;;  %v660_v55 = vsel %vm604_vm2, %v568_v28, 0.0  ;;  %v703_v62 = vsel %vm604_vm2, %v587_v9, 0.0 }
 0x11a   :  { %v697_v20 = vsel %vm604_vm2, %v584_v7, 0.0  ;;  %791 = vmatpush.bf16.msrb.mxu1 %v1026_v52  ;;  %v662_v1 = vsel %vm604_vm2, %v569_v44, 0.0  ;;  %v571_v7 = vmax.f32 %v458_v15, 0.0  ;;  %v705_v11 = vsel %vm604_vm2, %v588_v57, 0.0  ;;  %v1042_v57 = vpop.eup %1041 }
 0x11b   :  { %v649_v13 = vadd.f32 %v648_v4, %v647_v49  ;;  %v698_v32 = vadd.f32 %v697_v20, %v696_v41  ;;  %v508_v4 = vadd.f32 %v1239_v39, %v1281_v22  ;;  %v513_v22 = vadd.f32 %v1239_v39, %v1293_v36 }
 0x11c   :  { %v666_v29 = vsel %vm604_vm2, %v571_v7, 0.0  ;;  %v518_v34 = vadd.f32 %v1239_v39, %v1308_v48  ;;  %v521_v41 = vadd.f32 %v1239_v39, %v1320_v0  ;;  %v535_v51 = vpop.f32.mrf.mxu3  ;;  %v526_v48 = vadd.f32 %v1239_v39, %v1355_v23 }
 0x11d   :  { %v651_v19 = vadd.f32 %v650_v16, %v649_v13  ;;  %v492_v37 = vpop.f32.mrf.mxu2  ;;  %v664_v16 = vsel %vm604_vm2, %v570_v59, 0.0  ;;  %v591_v45 = vmax.f32 %v508_v4, 0.0  ;;  %vm748_vm3 = vweird.f32 %v1042_v57 }
 0x11e   :  { %v493_v21 = vadd.f32 %v1239_v39, %v492_v37  ;;  %v595_v42 = vmax.f32 %v518_v34, 0.0 }
 0x11f   :  { %v653_v6 = vadd.f32 %v652_v17, %v651_v19  ;;  %v707_v17 = vsel %vm604_vm2, %v589_v2, 0.0  ;;  %v592_v19 = vmax.f32 %v511_v10, 0.0  ;;  %v711_v20 = vsel %vm604_vm2, %v591_v45, 0.0 }
 0x120   :  { %v585_v27 = vmax.f32 %v493_v21, 0.0  ;;  %v593_v21 = vmax.f32 %v513_v22, 0.0  ;;  %v719_v0 = vsel %vm604_vm2, %v595_v42, 0.0 }
 0x121   :  { %v655_v8 = vadd.f32 %v654_v43, %v653_v6  ;;  %v713_v36 = vsel %vm604_vm2, %v592_v19, 0.0  ;;  %v594_v6 = vmax.f32 %v516_v31, 0.0 }
 0x122   :  { %v699_v50 = vsel %vm604_vm2, %v585_v27, 0.0  ;;  %v523_v27 = vadd.f32 %v1239_v39, %v1334_v40  ;;  %v598_v40 = vmax.f32 %v526_v48, 0.0 }
 0x123   :  { %v657_v47 = vadd.f32 %v656_v14, %v655_v8  ;;  %v700_v58 = vadd.f32 %v699_v50, %v698_v32  ;;  %v715_v14 = vsel %vm604_vm2, %v593_v21, 0.0  ;;  %v717_v9 = vsel %vm604_vm2, %v594_v6, 0.0 }
 0x124   :  { %v596_v8 = vmax.f32 %v521_v41, 0.0  ;;  %v597_v54 = vmax.f32 %v523_v27, 0.0  ;;  %v528_v50 = vadd.f32 %v1239_v39, %v1385_v25  ;;  %v1040_v27 = vld [vmem:[%s1490_s4] ss:$0 sm:$0xff] }
 0x125   :  { %v702_v56 = vadd.f32 %v701_v26, %v700_v58  ;;  %v659_v53 = vadd.f32 %v658_v35, %v657_v47  ;;  %v531_v47 = vadd.f32 %v1239_v39, %v1411_v61  ;;  %v533_v26 = vadd.f32 %v1239_v39, %v532_v5 }
 0x126   :  { %v721_v44 = vsel %vm604_vm2, %v596_v8, 0.0  ;;  %v723_v23 = vsel %vm604_vm2, %v597_v54, 0.0  ;;  %v599_v15 = vmax.f32 %v528_v50, 0.0 }
 0x127   :  { %v704_v49 = vadd.f32 %v703_v62, %v702_v56  ;;  %v661_v60 = vadd.f32 %v660_v55, %v659_v53  ;;  %v537_v55 = vpop.f32.mrf.mxu3  ;;  %v725_v56 = vsel %vm604_vm2, %v598_v40, 0.0  ;;  %v600_v25 = vmax.f32 %v531_v47, 0.0 }
 0x128   :  { %v536_v53 = vadd.f32 %v1239_v39, %v535_v51  ;;  %v727_v2 = vsel %vm604_vm2, %v599_v15, 0.0  ;;  %v601_v61 = vmax.f32 %v533_v26, 0.0  ;;  %v538_v4 = vadd.f32 %v1239_v39, %v537_v55 }
 0x129   :  { %v706_v12 = vadd.f32 %v705_v11, %v704_v49  ;;  %v663_v13 = vadd.f32 %v662_v1, %v661_v60  ;;  %v744_v1 = vmul.f32 256.0, %v1042_v57  ;;  %v729_v60 = vsel %vm604_vm2, %v600_v25, 0.0 }
 0x12a   :  { %v602_v5 = vmax.f32 %v536_v53, 0.0  ;;  %v731_v33 = vsel %vm604_vm2, %v601_v61, 0.0  ;;  %v603_v10 = vmax.f32 %v538_v4, 0.0 }
 0x12b   :  { %v708_v63 = vadd.f32 %v707_v17, %v706_v12  ;;  %v665_v30 = vadd.f32 %v664_v16, %v663_v13  ;;  %v745_v12 = vsub.f32 1.0, %v744_v1 }
 0x12c   :  { %v733_v16 = vsel %vm604_vm2, %v602_v5, 0.0  ;;  %v735_v22 = vsel %vm604_vm2, %v603_v10, 0.0 }
 0x12d   :  { %v710_v37 = vadd.f32 %v709_v18, %v708_v63  ;;  %v667_v43 = vadd.f32 %v666_v29, %v665_v30  ;;  %v746_v63 = vmul.f32 %v1042_v57, %v745_v12 }
 0x12f   :  { %v712_v24 = vadd.f32 %v711_v20, %v710_v37  ;;  %v668_v58 = vrot.slane %v667_v43, 4  ;;  %v747_v18 = vadd.f32 %v1042_v57, %v746_v63 }
 0x131   :  { %v714_v46 = vadd.f32 %v713_v36, %v712_v24  ;;  %v669_v59 = vadd.f32 %v668_v58, %v667_v43  ;;  %v749_v43 = vsel %vm748_vm3, %v1042_v57, %v747_v18 }
 0x133   :  { %v716_v28 = vadd.f32 %v715_v14, %v714_v46  ;;  %v670_v7 = vrot.slane %v669_v59, 2 }
 0x135   :  { %v718_v32 = vadd.f32 %v717_v9, %v716_v28  ;;  %v671_v17 = vadd.f32 %v670_v7, %v669_v59 }
 0x137   :  { %v720_v35 = vadd.f32 %v719_v0, %v718_v32  ;;  %v672_v29 = vrot.slane %v671_v17, 1 }
 0x139   :  { %v722_v52 = vadd.f32 %v721_v44, %v720_v35  ;;  %v673_v37 = vadd.f32 %v672_v29, %v671_v17 }
 0x13b   :  { %v724_v3 = vadd.f32 %v723_v23, %v722_v52  ;;  %v750_v34 = vmul.f32 %v749_v43, %v673_v37 }
 0x13d   :  { %v726_v62 = vadd.f32 %v725_v56, %v724_v3  ;;  %v752_v6 = vpack.c.bf16 %v750_v34, %v750_v34 }
 0x13f   :  { %v728_v49 = vadd.f32 %v727_v2, %v726_v62  ;;  %v764_v46 = vunpack.c.l.b16 %v752_v6 }
 0x141   :  { %v730_v11 = vadd.f32 %v729_v60, %v728_v49 }
 0x143   :  { %v732_v13 = vadd.f32 %v731_v33, %v730_v11 }
 0x145   :  { %v734_v45 = vadd.f32 %v733_v16, %v732_v13 }
 0x147   :  { %v736_v39 = vadd.f32 %v735_v22, %v734_v45 }
 0x149   :  { %v737_v30 = vrot.slane %v736_v39, 4 }
 0x14b   :  { %v738_v19 = vadd.f32 %v737_v30, %v736_v39 }
 0x14d   :  { %v739_v31 = vrot.slane %v738_v19, 2 }
 0x14f   :  { %v740_v20 = vadd.f32 %v739_v31, %v738_v19 }
 0x151   :  { %v741_v21 = vrot.slane %v740_v20, 1 }
 0x153   :  { %v742_v24 = vadd.f32 %v741_v21, %v740_v20 }
 0x155   :  { %v751_v36 = vmul.f32 %v749_v43, %v742_v24 }
 0x157   :  { %v753_v41 = vpack.c.bf16 %v751_v36, %v751_v36 }
 0x159   :  { %v765_v51 = vunpack.c.l.b16 %v753_v41 }
 0x15b   :  { %v767_v14 = vsel %vm766_vm4, %v765_v51, %v764_v46 }
 0x15c   :  { %v768_v42 = vpack.c.b16 %v767_v14, %v767_v14 }
 0x15e   :  { %991 = vmatmul.msk.bf16.vlgmr.msrb.gmra.mxu1 %vm604_vm2, %v768_v42 }
 0x1db   :  { %v793_v28 = vpop.f32.mrf.mxu1 }
 0x1dc   :  { %v794_v9 = vadd.f32 %v1040_v27, %v793_v28 }
 0x1de   :  { %798 = vst.msk [vmem:[#allocation2] sm:$0x3] %vm797_vm5, %v794_v9 }
 0x1df   :  { %809 = dma.vmem_to_hbm [thread:$0]  %s805_s16, 32, %s807_s19, [#allocation3]  }
 0x1e3   :  { %v795_v8 = vpop.f32.mrf.mxu1 }
 0x1e4   :  { %1067 = dma.done.wait [#allocation3], 32  }
 0x1e5   :  { %1068 = vsyncadd [#allocation3], 4294967264 }
 0x1e6   :  { %814 = vsyncpa [#allocation3], 1 }

</bundles_post_ra>
